<compile_context>
chip_gen: v7x
topology: tpu7x:2x2x1
jax: 0.10.0
libtpu: 0.0.40
codegen_flags: <defaults>
</compile_context>

<pallas_src>
import jax
import jax.numpy as jnp
from jax.experimental import pallas as pl
from jax.experimental.pallas import tpu as pltpu


def _tokenizer_kernel(x_ref, w_ref, b_ref, pos_ref, out_ref):
    """Per-grid-step body.

    x_ref:   (Bb, C, HW)  channels-first batch block (free reshape of NCHW)
    w_ref:   (L, C)       1x1-conv weight with eval-mode BN folded in
    b_ref:   (L, 1)       folded BN bias
    pos_ref: (L, C)       positional token
    out_ref: (Bb, L, C)
    """
    w = w_ref[...]                                   # (L, C)
    pos = pos_ref[...]                               # (L, C)
    bb = x_ref.shape[0]                              # static batch block size
    L = w.shape[0]
    hw = x_ref.shape[2]

    # Hoist the (L,1)->(L,HW) bias broadcast out of the batch loop: JAX does
    # not CSE broadcast_in_dim, so leaving it inside emits it bb times.
    bias_hw = jnp.broadcast_to(b_ref[...], (L, hw))  # (L, HW)

    def process_one(b):
        x = x_ref[b]                                                  # (C, HW)

        # 1x1 conv + folded BN + ReLU, channels-first (HW on the lane axis).
        s = jnp.dot(w, x, preferred_element_type=jnp.float32) + bias_hw
        s = jnp.maximum(s, 0.0)                                       # (L, HW)

        # Softmax over the token axis L (== dim=1 of the (B, L, HW) tensor):
        # an 8-sublane reduce per pixel column.  Exact divide (the approx
        # reciprocal cost ~1e-2 abs error vs the f32 reference; this op is
        # HBM-bound so the exact divide is free on wall clock).
        m = jnp.max(s, axis=0, keepdims=True)                         # (1, HW)
        e = jnp.exp(s - m)                                            # (L, HW)
        denom = jnp.sum(e, axis=0, keepdims=True)                     # (1, HW)
        p = e / denom                                                 # (L, HW)

        # out[l, c] = sum_hw p[l, hw] * x[c, hw] -- contract HW directly via
        # dimension_numbers; no explicit transpose of p or x is materialised.
        out = jax.lax.dot_general(
            p, x,
            dimension_numbers=(((1,), (1,)), ((), ())),
            preferred_element_type=jnp.float32)                       # (L, C)

        out_ref[b] = (out + pos).astype(out_ref.dtype)

    if bb <= 8:
        # Small blocks: static unroll (full scheduler visibility, static refs).
        for b in range(bb):
            process_one(b)
    else:
        # Large blocks: bounded unroll so vreg live ranges stay small and
        # spills don't steal the store slot.
        def body(b, carry):
            process_one(b)
            return carry
        jax.lax.fori_loop(0, bb, body, None, unroll=4)


def _hw_config():
    """Generation-aware blocking / VMEM budgets, with a fallback that is safe
    on every TPU generation if the device kind cannot be determined."""
    try:
        kind = jax.devices()[0].device_kind.lower()
    except Exception:
        kind = ""
    if "v7" in kind:
        # 2 TensorCores, 64 MiB VMEM per TC: big tiles, even grid split.
        return dict(dual_tc=True, tile_budget=14 << 20, vmem_limit=56 << 20)
    if "v5p" in kind or "v4" in kind:
        # Megacore parts: 2 cores share "parallel" grid axes; 128 MiB VMEM.
        return dict(dual_tc=True, tile_budget=24 << 20, vmem_limit=96 << 20)
    if "v5" in kind or "v6" in kind:
        # Single TensorCore, 128 MiB VMEM: one big step at small B is best.
        return dict(dual_tc=False, tile_budget=24 << 20, vmem_limit=96 << 20)
    # Unknown backend (e.g. interpret mode): conservative, safe everywhere.
    return dict(dual_tc=False, tile_budget=8 << 20, vmem_limit=48 << 20)


def _choose_blocking(B, bytes_per_elem, *, dual_tc, tile_budget, max_bb=128):
    """Pick (block_b, grid).  The op is HBM-/per-step-overhead-bound, so aim
    for the fewest, largest steps whose double-buffered x tile fits the VMEM
    budget; on dual-TC parts keep >= 2 steps (and prefer an even count) so
    both cores get work."""
    cap = max(1, min(max_bb, tile_budget // max(1, bytes_per_elem)))
    steps = pl.cdiv(B, cap)
    if dual_tc and B >= 2:
        steps = max(steps, 2)
        if steps % 2:
            steps += 1            # even work split across the two TensorCores
    block_b = pl.cdiv(B, steps)   # balanced block size, always <= cap
    return block_b, steps


def semantic_tokenizer(x_nchw, conv_w, bn_gamma, bn_beta, bn_mean, bn_var,
                       pos_token, *, eps=1e-5):
    """x_nchw: (B, C, H, W) float32.  Returns (B, L, C)."""
    B, C, H, W = x_nchw.shape
    L = conv_w.shape[0]
    HW = H * W

    # Glue: NCHW -> (B, C, HW).  Free, contiguous reshape (no transpose pass).
    x_cf = x_nchw.reshape(B, C, HW)

    # Glue: fold eval-mode BatchNorm into the 1x1 conv.
    # TODO(synk): PyTorch BN in train mode uses batch statistics; we implement
    #             eval-mode BN with deterministic running stats.
    w2d = conv_w.reshape(L, C)                               # (L, C)
    scale = bn_gamma / jnp.sqrt(bn_var + eps)                # (L,)
    w_fold = w2d * scale[:, None]                            # (L, C)
    b_fold = (bn_beta - bn_mean * scale).reshape(L, 1)       # (L, 1)
    pos = pos_token.reshape(L, C)                            # patch_dims == C

    cfg = _hw_config()
    bytes_per_elem = C * HW * x_cf.dtype.itemsize
    block_b, grid = _choose_blocking(
        B, bytes_per_elem, dual_tc=cfg["dual_tc"], tile_budget=cfg["tile_budget"])

    B_pad = block_b * grid
    if B_pad != B:
        # Awkward B: pad to a grid multiple (padding < grid batch elements);
        # the padded output rows are sliced off below.  Zero padding is safe
        # (softmax of the bias-only activations, contracted with zeros).
        x_cf = jnp.pad(x_cf, ((0, B_pad - B), (0, 0), (0, 0)))

    out = pl.pallas_call(
        _tokenizer_kernel,
        out_shape=jax.ShapeDtypeStruct((B_pad, L, C), x_cf.dtype),
        grid_spec=pltpu.PrefetchScalarGridSpec(
            num_scalar_prefetch=0,
            grid=(grid,),
            in_specs=[
                pl.BlockSpec((block_b, C, HW), lambda g: (g, 0, 0)),  # x block
                pl.BlockSpec((L, C), lambda g: (0, 0)),               # weight
                pl.BlockSpec((L, 1), lambda g: (0, 0)),               # bias
                pl.BlockSpec((L, C), lambda g: (0, 0)),               # pos token
            ],
            out_specs=pl.BlockSpec((block_b, L, C), lambda g: (g, 0, 0)),
        ),
        compiler_params=pltpu.CompilerParams(
            dimension_semantics=("parallel",),
            vmem_limit_bytes=cfg["vmem_limit"],
        ),
    )(x_cf, w_fold, b_fold, pos)

    return out[:B] if B_pad != B else out


def _reference(x_nchw, conv_w, bn_gamma, bn_beta, bn_mean, bn_var, pos_token,
               eps=1e-5):
    B, C, H, W = x_nchw.shape
    L = conv_w.shape[0]
    hi = jax.lax.Precision.HIGHEST
    # 1x1 conv (full f32 precision so the comparison is apples-to-apples)
    y = jnp.einsum('bchw,lc->blhw', x_nchw, conv_w.reshape(L, C), precision=hi)
    # eval-mode BN
    y = (y - bn_mean[None, :, None, None]) / jnp.sqrt(bn_var + eps)[None, :, None, None]
    y = y * bn_gamma[None, :, None, None] + bn_beta[None, :, None, None]
    y = jnp.maximum(y, 0.0)
    path_b = y.reshape(B, L, H * W)
    path_b = jax.nn.softmax(path_b, axis=1)          # softmax over token axis
    path_a = jnp.transpose(x_nchw, (0, 2, 3, 1)).reshape(B, H * W, C)
    out = jnp.einsum('bln,bnc->blc', path_b, path_a, precision=hi) + pos_token
    return out


if __name__ == "__main__":
    # Small shapes consistent with the module: in_channels=32, len_token=8,
    # patch_dims=32 (must equal in_channels for the pos-token add).
    B, C, H, W = 2, 32, 16, 16
    L = 8          # len_token
    P = C          # patch_dims

    key = jax.random.PRNGKey(0)
    k_x, k_w, k_g, k_b, k_m, k_v, k_p = jax.random.split(key, 7)

    x = jax.random.normal(k_x, (B, C, H, W), dtype=jnp.float32)

    # Conv2d(C->L, 1x1, bias=False) weight
    conv_w = jax.random.normal(k_w, (L, C, 1, 1), dtype=jnp.float32) * 0.1
    # BatchNorm2d(L) parameters (eval-mode semantics)
    bn_gamma = 1.0 + 0.1 * jax.random.normal(k_g, (L,), dtype=jnp.float32)
    bn_beta = 0.1 * jax.random.normal(k_b, (L,), dtype=jnp.float32)
    bn_mean = 0.05 * jax.random.normal(k_m, (L,), dtype=jnp.float32)
    bn_var = jnp.abs(1.0 + 0.1 * jax.random.normal(k_v, (L,), dtype=jnp.float32))
    # pos_token: nn.Parameter(torch.zeros(1, L, P)) -- zero-init in the module,
    # but use small deterministic values so the add is exercised.
    pos_token = 0.01 * jax.random.normal(k_p, (1, L, P), dtype=jnp.float32)

    out = semantic_tokenizer(x, conv_w, bn_gamma, bn_beta, bn_mean, bn_var,
                             pos_token)
    out = jax.block_until_ready(out)

    ref = _reference(x, conv_w, bn_gamma, bn_beta, bn_mean, bn_var, pos_token)
    assert out.shape == (B, L, C), out.shape
    err = float(jnp.max(jnp.abs(out - ref)))
    assert jnp.allclose(out, ref, atol=1e-3, rtol=1e-3), err

    print("KERNEL_OK")
</pallas_src>

<mosaic_0001>
module attributes {stable_mosaic.version = 11 : i64} {
  func.func @_tokenizer_kernel(%arg0: i32, %arg1: memref<2x32x256xf32, #tpu.memory_space<vmem>>, %arg2: memref<8x32xf32, #tpu.memory_space<vmem>>, %arg3: memref<8x1xf32, #tpu.memory_space<vmem>>, %arg4: memref<8x32xf32, #tpu.memory_space<vmem>>, %arg5: memref<2x8x32xf32, #tpu.memory_space<vmem>>) attributes {dimension_semantics = [#tpu.dimension_semantics<parallel>], iteration_bounds = array<i64: 1>, scalar_prefetch = 0 : i64, scratch_operands = 0 : i64, tpu.core_type = #tpu.core_type<tc>, window_params = [{transform_indices = @transform_0, window_bounds = array<i64: 2, 32, 256>}, {pipeline_mode = #tpu.pipeline_mode<synchronous>, transform_indices = @transform_1, window_bounds = array<i64: 8, 32>}, {pipeline_mode = #tpu.pipeline_mode<synchronous>, transform_indices = @transform_2, window_bounds = array<i64: 8, 1>}, {pipeline_mode = #tpu.pipeline_mode<synchronous>, transform_indices = @transform_3, window_bounds = array<i64: 8, 32>}, {transform_indices = @transform_4, window_bounds = array<i64: 2, 8, 32>}]} {
    %c0 = arith.constant 0 : index
    %c0_0 = arith.constant 0 : index
    %0 = vector.load %arg2[%c0, %c0_0] : memref<8x32xf32, #tpu.memory_space<vmem>>, vector<8x32xf32>
    %c0_1 = arith.constant 0 : index
    %c0_2 = arith.constant 0 : index
    %1 = vector.load %arg4[%c0_1, %c0_2] : memref<8x32xf32, #tpu.memory_space<vmem>>, vector<8x32xf32>
    %c0_3 = arith.constant 0 : index
    %c0_4 = arith.constant 0 : index
    %2 = vector.load %arg3[%c0_3, %c0_4] : memref<8x1xf32, #tpu.memory_space<vmem>>, vector<8x1xf32>
    %3 = vector.shape_cast %2 : vector<8x1xf32> to vector<8x1xf32>
    %4 = vector.broadcast %3 : vector<8x1xf32> to vector<8x256xf32>
    %c0_5 = arith.constant 0 : index
    %c0_6 = arith.constant 0 : index
    %c0_7 = arith.constant 0 : index
    %5 = vector.load %arg1[%c0_5, %c0_6, %c0_7] : memref<2x32x256xf32, #tpu.memory_space<vmem>>, vector<1x32x256xf32>
    %6 = vector.shape_cast %5 : vector<1x32x256xf32> to vector<32x256xf32>
    %cst = arith.constant dense<0.000000e+00> : vector<8x256xf32>
    %7 = tpu.matmul %0, %6, %cst {dimension_numbers = #tpu.dot_dimension_numbers<[1], [0], [0], [1], [0, 0, 1, 1], [], []>} : vector<8x32xf32>, vector<32x256xf32>, vector<8x256xf32> -> vector<8x256xf32>
    %8 = arith.addf %7, %4 : vector<8x256xf32>
    %cst_8 = arith.constant 0.000000e+00 : f32
    %9 = vector.broadcast %cst_8 : f32 to vector<8x256xf32>
    %10 = arith.maximumf %8, %9 : vector<8x256xf32>
    %cst_9 = arith.constant dense<0xFF800000> : vector<256xf32>
    %11 = vector.multi_reduction <maximumf>, %10, %cst_9 [0] : vector<8x256xf32> to vector<256xf32>
    %12 = vector.shape_cast %11 : vector<256xf32> to vector<1x256xf32>
    %13 = vector.broadcast %12 : vector<1x256xf32> to vector<8x256xf32>
    %14 = arith.subf %10, %13 : vector<8x256xf32>
    %15 = math.exp %14 : vector<8x256xf32>
    %cst_10 = arith.constant dense<0.000000e+00> : vector<256xf32>
    %16 = vector.multi_reduction <add>, %15, %cst_10 [0] : vector<8x256xf32> to vector<256xf32>
    %17 = vector.shape_cast %16 : vector<256xf32> to vector<1x256xf32>
    %18 = vector.broadcast %17 : vector<1x256xf32> to vector<8x256xf32>
    %19 = arith.divf %15, %18 : vector<8x256xf32>
    %cst_11 = arith.constant dense<0.000000e+00> : vector<8x32xf32>
    %20 = tpu.matmul %19, %6, %cst_11 {dimension_numbers = #tpu.dot_dimension_numbers<[1], [1], [0], [0], [0, 0, 1, 0], [], []>} : vector<8x256xf32>, vector<32x256xf32>, vector<8x32xf32> -> vector<8x32xf32>
    %21 = arith.addf %20, %1 : vector<8x32xf32>
    %c0_12 = arith.constant 0 : index
    %c0_13 = arith.constant 0 : index
    %c0_14 = arith.constant 0 : index
    %22 = vector.load %arg5[%c0_12, %c0_13, %c0_14] : memref<2x8x32xf32, #tpu.memory_space<vmem>>, vector<1x8x32xf32>
    %23 = vector.shape_cast %22 : vector<1x8x32xf32> to vector<8x32xf32>
    %24 = vector.shape_cast %21 : vector<8x32xf32> to vector<1x8x32xf32>
    tpu.vector_store %arg5[%c0_12, %c0_13, %c0_14], %24 {strides = array<i32>} : memref<2x8x32xf32, #tpu.memory_space<vmem>>, vector<1x8x32xf32>,
    %c1 = arith.constant 1 : index
    %c0_15 = arith.constant 0 : index
    %c0_16 = arith.constant 0 : index
    %25 = vector.load %arg1[%c1, %c0_15, %c0_16] : memref<2x32x256xf32, #tpu.memory_space<vmem>>, vector<1x32x256xf32>
    %26 = vector.shape_cast %25 : vector<1x32x256xf32> to vector<32x256xf32>
    %cst_17 = arith.constant dense<0.000000e+00> : vector<8x256xf32>
    %27 = tpu.matmul %0, %26, %cst_17 {dimension_numbers = #tpu.dot_dimension_numbers<[1], [0], [0], [1], [0, 0, 1, 1], [], []>} : vector<8x32xf32>, vector<32x256xf32>, vector<8x256xf32> -> vector<8x256xf32>
    %28 = arith.addf %27, %4 : vector<8x256xf32>
    %cst_18 = arith.constant 0.000000e+00 : f32
    %29 = vector.broadcast %cst_18 : f32 to vector<8x256xf32>
    %30 = arith.maximumf %28, %29 : vector<8x256xf32>
    %cst_19 = arith.constant dense<0xFF800000> : vector<256xf32>
    %31 = vector.multi_reduction <maximumf>, %30, %cst_19 [0] : vector<8x256xf32> to vector<256xf32>
    %32 = vector.shape_cast %31 : vector<256xf32> to vector<1x256xf32>
    %33 = vector.broadcast %32 : vector<1x256xf32> to vector<8x256xf32>
    %34 = arith.subf %30, %33 : vector<8x256xf32>
    %35 = math.exp %34 : vector<8x256xf32>
    %cst_20 = arith.constant dense<0.000000e+00> : vector<256xf32>
    %36 = vector.multi_reduction <add>, %35, %cst_20 [0] : vector<8x256xf32> to vector<256xf32>
    %37 = vector.shape_cast %36 : vector<256xf32> to vector<1x256xf32>
    %38 = vector.broadcast %37 : vector<1x256xf32> to vector<8x256xf32>
    %39 = arith.divf %35, %38 : vector<8x256xf32>
    %cst_21 = arith.constant dense<0.000000e+00> : vector<8x32xf32>
    %40 = tpu.matmul %39, %26, %cst_21 {dimension_numbers = #tpu.dot_dimension_numbers<[1], [1], [0], [0], [0, 0, 1, 0], [], []>} : vector<8x256xf32>, vector<32x256xf32>, vector<8x32xf32> -> vector<8x32xf32>
    %41 = arith.addf %40, %1 : vector<8x32xf32>
    %c1_22 = arith.constant 1 : index
    %c0_23 = arith.constant 0 : index
    %c0_24 = arith.constant 0 : index
    %42 = vector.load %arg5[%c1_22, %c0_23, %c0_24] : memref<2x8x32xf32, #tpu.memory_space<vmem>>, vector<1x8x32xf32>
    %43 = vector.shape_cast %42 : vector<1x8x32xf32> to vector<8x32xf32>
    %44 = vector.shape_cast %41 : vector<8x32xf32> to vector<1x8x32xf32>
    tpu.vector_store %arg5[%c1_22, %c0_23, %c0_24], %44 {strides = array<i32>} : memref<2x8x32xf32, #tpu.memory_space<vmem>>, vector<1x8x32xf32>,
    return
  }
  func.func @transform_0(%arg0: i32) -> (i32, i32, i32) {
    %c0_i32 = arith.constant 0 : i32
    %c0_i32_0 = arith.constant 0 : i32
    %c0_i32_1 = arith.constant 0 : i32
    return %arg0, %c0_i32, %c0_i32_0 : i32, i32, i32
  }
  func.func @transform_1(%arg0: i32) -> (i32, i32) {
    %c0_i32 = arith.constant 0 : i32
    %c0_i32_0 = arith.constant 0 : i32
    %c0_i32_1 = arith.constant 0 : i32
    return %c0_i32, %c0_i32_0 : i32, i32
  }
  func.func @transform_2(%arg0: i32) -> (i32, i32) {
    %c0_i32 = arith.constant 0 : i32
    %c0_i32_0 = arith.constant 0 : i32
    %c0_i32_1 = arith.constant 0 : i32
    return %c0_i32, %c0_i32_0 : i32, i32
  }
  func.func @transform_3(%arg0: i32) -> (i32, i32) {
    %c0_i32 = arith.constant 0 : i32
    %c0_i32_0 = arith.constant 0 : i32
    %c0_i32_1 = arith.constant 0 : i32
    return %c0_i32, %c0_i32_0 : i32, i32
  }
  func.func @transform_4(%arg0: i32) -> (i32, i32, i32) {
    %c0_i32 = arith.constant 0 : i32
    %c0_i32_0 = arith.constant 0 : i32
    %c0_i32_1 = arith.constant 0 : i32
    return %arg0, %c0_i32, %c0_i32_0 : i32, i32, i32
  }
}

</mosaic_0001>

<bundles_post_ra>
// kernel: tpu_custom_call.1
= control target key start
LH: loop header
LB: loop body
LE: loop exit
PB: predicated region body
PF: predicated region fallthrough
CT: control target
= control target key end

     0   :  { %9 = vsyncpa [#allocation3], 0  ;;  %s612_s0 = inlined_call_operand.hbm [shape: f32[2,32,256], index: 0, kind: input, shape index: {}]   ;;  %s613_s1 = inlined_call_operand.vmem [shape: f32[8,32], index: 1, kind: input, shape index: {}]   ;;  %s614_s2 = inlined_call_operand.vmem [shape: f32[8,1], index: 2, kind: input, shape index: {}]   ;;  %s615_s3 = inlined_call_operand.vmem [shape: f32[8,32], index: 3, kind: input, shape index: {}]   ;;  %s616_s4 = inlined_call_operand.hbm [shape: f32[2,8,32], index: 4, kind: output, shape index: {}]  }
   0x1   :  { %10 = vsyncpa [#allocation4], 0  ;;  %s542_s15 = smov [#allocation2]   ;;  %s494_s19 = scalar_lea.hbm %s612_s0, 2048 }
   0x2   :  { %s16_s16 = sshll.u32 %s542_s15, 4  ;;  %p495_p0 = scmp.ne.s32.totalorder %s612_s0, %s494_s19  ;;  %s17_s16 = int_to_ptr.vmem [resolvable:$true] %s16_s16 }
   0x3   :  { %p498_p1 = scmp.lt.u32.totalorder %s494_s19, %s612_s0 }
   0x5   :  { %p500_p2 = pnand %p498_p1, %p495_p0 }
   0x7   :  { %503 = shalt.err (!%p500_p2)
}
   0x8   :  { %s504_s24 = scalar_lea.vmem %s17_s16, 2048  ;;  %p509_p4 = scmp.lt.s32.totalorder %s17_s16, %s17_s16 }
   0x9   :  { %p505_p3 = scmp.ne.s32.totalorder %s17_s16, %s504_s24  ;;  %p510_p5 = scmp.lt.s32.totalorder %s504_s24, %s504_s24 }
   0xb   :  { %p511_p6 = por %p510_p5, %p509_p4 }
   0xd   :  { %p512_p7 = pnand %p511_p6, %p505_p3 }
   0xf   :  { %515 = shalt.err (!%p512_p7)
}
  0x10   :  { %s543_s25 = smov 256   ;;  %s544_s26 = smov 16  }
  0x11   :  { %22 = dma.hbm_to_vmem [thread:$0]  %s612_s0, 2048, %s17_s16, [#allocation3], %s543_s25, %s543_s25, %s544_s26  }
  0x12   :  { %538 = dma.done.wait [#allocation3], 2048  }
  0x13   :  { %539 = vsyncadd [#allocation3], 4294965248  ;;  %v545_v0 = vmov 0.0   ;;  %v546_v1 = vmov 0   ;;  %v41_v2 = vld [vmem:[#allocation2 + $0x8] sm:$0xff]  ;;  %v43_v3 = vld [vmem:[#allocation2 + $0x18] sm:$0xff] }
  0x14   :  { %116 = vmatprep.mubr.f32.mxu1 %v545_v0  ;;  %303 = vmatprep.mubr.f32.mxu0 %v545_v0  ;;  %v232_v4 = vld [vmem:[#allocation2 + $0x48] sm:$0xff]  ;;  %v437_v5 = vpack.c.bf16 %v43_v3, %v41_v2  ;;  %v234_v6 = vld [vmem:[#allocation2 + $0x58] sm:$0xff]  ;;  %v40_v7 = vld [vmem:[#allocation2] sm:$0xff]  ;;  %vm48_vm0 = vcmask 261120   ;;  %s547_s6 = smov [#allocation5]  }
  0x15   :  { %477 = vset.pattern.permute.xlu0 %v546_v1  ;;  %v42_v8 = vld [vmem:[#allocation2 + $0x10] sm:$0xff]  ;;  %v453_v9 = vpack.c.bf16 %v234_v6, %v232_v4  ;;  %v231_v11 = vld [vmem:[#allocation2 + $0x40] sm:$0xff]  ;;  %v45_v13 = vld [vmem:[#allocation2 + $0x28] sm:$0xff]  ;;  %s423_s7 = sshll.u32 %s547_s6, 4  ;;  %s424_s7 = int_to_ptr.vmem [resolvable:$true] %s423_s7 }
  0x16   :  { %v439_v10 = vpack.c.bf16 %v42_v8, %v40_v7  ;;  %v233_v12 = vld [vmem:[#allocation2 + $0x50] sm:$0xff]  ;;  %438 = vmatprep.subr.bf16.mxu1 %v437_v5  ;;  %v47_v15 = vld [vmem:[#allocation2 + $0x38] sm:$0xff]  ;;  %v236_v16 = vld [vmem:[#allocation2 + $0x68] sm:$0xff]  ;;  %s516_s8 = scalar_lea.vmem %s424_s7, 256  ;;  %p521_p9 = scmp.lt.s32.totalorder %s424_s7, %s424_s7 }
  0x17   :  { %v455_v14 = vpack.c.bf16 %v233_v12, %v231_v11  ;;  %v238_v17 = vld [vmem:[#allocation2 + $0x78] sm:$0xff]  ;;  %454 = vmatprep.subr.bf16.mxu0 %v453_v9  ;;  %v441_v18 = vpack.c.bf16 %v47_v15, %v45_v13  ;;  %v44_v20 = vld [vmem:[#allocation2 + $0x20] sm:$0xff]  ;;  %v46_v21 = vld [vmem:[#allocation2 + $0x30] sm:$0xff]  ;;  %p517_p8 = scmp.ne.s32.totalorder %s424_s7, %s516_s8  ;;  %p522_p10 = scmp.lt.s32.totalorder %s516_s8, %s516_s8 }
  0x18   :  { %440 = vmatpush1.bf16.msra.mxu1 %v439_v10  ;;  %v457_v19 = vpack.c.bf16 %v238_v17, %v236_v16  ;;  %v235_v22 = vld [vmem:[#allocation2 + $0x60] sm:$0xff]  ;;  %v443_v23 = vpack.c.bf16 %v46_v21, %v44_v20  ;;  %v237_v24 = vld [vmem:[#allocation2 + $0x70] sm:$0xff] }
  0x19   :  { %456 = vmatpush1.bf16.msra.mxu0 %v455_v14  ;;  %v34_v25 = vld [vmem:[%s614_s2] sm:$0xff]  ;;  %442 = vmatprep.subr.bf16.mxu1 %v441_v18  ;;  %v459_v26 = vpack.c.bf16 %v237_v24, %v235_v22  ;;  %p523_p11 = por %p522_p10, %p521_p9 }
  0x1a   :  { %458 = vmatprep.subr.bf16.mxu0 %v457_v19  ;;  %37 = vperm.xlu0 %477, %v34_v25   ;;  %v32_v27 = vld [vmem:[%s613_s1] sm:$0xff] }
  0x1b   :  { %p524_p12 = pnand %p523_p11, %p517_p8 }
  0x1c   :  { %444 = vmatpush1.bf16.msra.mxu1 %v443_v23 }
  0x1d   :  { %460 = vmatpush1.bf16.msra.mxu0 %v459_v26  ;;  %446 = vmatprep.subr.bf16.mxu1 %v437_v5 }
  0x1e   :  { %462 = vmatprep.subr.bf16.mxu0 %v453_v9 }
  0x1f   :  { %435 = vmatmul.mubr.msk.f32.vlgmr.msra.gmra.mrb[0].mxu1 %vm48_vm0, %v32_v27 }
  0x20   :  { %436 = vmatmul.mubr.msk.f32.vlgmr.msra.gmra.mrb[0].mxu0 %vm48_vm0, %v32_v27 }
  0x25   :  { %448 = vmatpush1.bf16.xpose.msra.mxu1 %v439_v10 }
  0x26   :  { %464 = vmatpush1.bf16.xpose.msra.mxu0 %v455_v14  ;;  %450 = vmatprep.subr.bf16.mxu1 %v441_v18 }
  0x27   :  { %466 = vmatprep.subr.bf16.mxu0 %v457_v19 }
  0x2d   :  { %452 = vmatpush1.bf16.xpose.msra.mxu1 %v443_v23 }
  0x2e   :  { %468 = vmatpush1.bf16.xpose.msra.mxu0 %v459_v26 }
  0x99   :  { %v38_v28 = vpop.permute.xlu0 %37 }
  0xf2   :  { %v118_v29 = vpop.f32.mrb[0].mxu1 }
  0xf3   :  { %v119_v30 = vadd.f32 %v118_v29, %v38_v28  ;;  %v305_v31 = vpop.f32.mrb[0].mxu0  ;;  %v120_v32 = vpop.f32.mrb[1].mxu1 }
  0xf4   :  { %v306_v33 = vadd.f32 %v305_v31, %v38_v28  ;;  %v121_v34 = vadd.f32 %v120_v32, %v38_v28  ;;  %v307_v35 = vpop.f32.mrb[1].mxu0 }
  0xf5   :  { %v123_v36 = vmax.f32 %v119_v30, 0.0  ;;  %v308_v37 = vadd.f32 %v307_v35, %v38_v28 }
  0xf6   :  { %v310_v38 = vmax.f32 %v306_v33, 0.0  ;;  %v124_v39 = vmax.f32 %v121_v34, 0.0 }
  0xf7   :  { %v125_v40 = vrot.slane %v123_v36, 4  ;;  %v311_v41 = vmax.f32 %v308_v37, 0.0 }
  0xf8   :  { %v312_v42 = vrot.slane %v310_v38, 4  ;;  %v131_v43 = vrot.slane %v124_v39, 4 }
  0xf9   :  { %v126_v44 = vmax.f32 %v123_v36, %v125_v40  ;;  %v318_v45 = vrot.slane %v311_v41, 4 }
  0xfa   :  { %v313_v46 = vmax.f32 %v310_v38, %v312_v42  ;;  %v132_v47 = vmax.f32 %v124_v39, %v131_v43 }
  0xfb   :  { %v127_v48 = vrot.slane %v126_v44, 2  ;;  %v319_v49 = vmax.f32 %v311_v41, %v318_v45  ;;  %v33_v45 = vld [vmem:[%s615_s3] sm:$0xff] }
  0xfc   :  { %v314_v50 = vrot.slane %v313_v46, 2  ;;  %v133_v51 = vrot.slane %v132_v47, 2 }
  0xfd   :  { %v128_v52 = vmax.f32 %v126_v44, %v127_v48  ;;  %v320_v53 = vrot.slane %v319_v49, 2 }
  0xfe   :  { %v315_v54 = vmax.f32 %v313_v46, %v314_v50  ;;  %v134_v55 = vmax.f32 %v132_v47, %v133_v51 }
  0xff   :  { %v129_v56 = vrot.slane %v128_v52, 1  ;;  %v321_v57 = vmax.f32 %v319_v49, %v320_v53 }
 0x100   :  { %v316_v58 = vrot.slane %v315_v54, 1  ;;  %v135_v59 = vrot.slane %v134_v55, 1 }
 0x101   :  { %v130_v60 = vmax.f32 %v128_v52, %v129_v56  ;;  %v322_v61 = vrot.slane %v321_v57, 1 }
 0x102   :  { %v317_v62 = vmax.f32 %v315_v54, %v316_v58  ;;  %v136_v63 = vmax.f32 %v134_v55, %v135_v59 }
 0x103   :  { %v137_v0 = vsub.f32 %v123_v36, %v130_v60  ;;  %v323_v1 = vmax.f32 %v321_v57, %v322_v61 }
 0x104   :  { %v324_v2 = vsub.f32 %v310_v38, %v317_v62  ;;  %v138_v3 = vsub.f32 %v124_v39, %v136_v63 }
 0x105   :  { %v139_v4 = vmul.f32 1.442695, %v137_v0  ;;  %v325_v5 = vsub.f32 %v311_v41, %v323_v1 }
 0x106   :  { %v326_v6 = vmul.f32 1.442695, %v324_v2  ;;  %v141_v7 = vmul.f32 1.442695, %v138_v3 }
 0x107   :  { %478 = vpow2.f32 %v139_v4  ;;  %v328_v8 = vmul.f32 1.442695, %v325_v5 }
 0x108   :  { %480 = vpow2.f32 %v326_v6 }
 0x109   :  { %482 = vpow2.f32 %v141_v7 }
 0x10a   :  { %484 = vpow2.f32 %v328_v8 }
 0x111   :  { %v479_v9 = vpop.eup %478 }
 0x112   :  { %v481_v10 = vpop.eup %480  ;;  %v143_v11 = vrot.slane %v479_v9, 4 }
 0x113   :  { %v483_v12 = vpop.eup %482  ;;  %v330_v13 = vrot.slane %v481_v10, 4 }
 0x114   :  { %v485_v14 = vpop.eup %484  ;;  %v149_v15 = vrot.slane %v483_v12, 4  ;;  %v144_v16 = vadd.f32 %v479_v9, %v143_v11 }
 0x115   :  { %v336_v17 = vrot.slane %v485_v14, 4  ;;  %v331_v18 = vadd.f32 %v481_v10, %v330_v13 }
 0x116   :  { %v150_v19 = vadd.f32 %v483_v12, %v149_v15  ;;  %v145_v20 = vrot.slane %v144_v16, 2 }
 0x117   :  { %v337_v21 = vadd.f32 %v485_v14, %v336_v17  ;;  %v332_v22 = vrot.slane %v331_v18, 2 }
 0x118   :  { %v151_v23 = vrot.slane %v150_v19, 2  ;;  %v146_v24 = vadd.f32 %v145_v20, %v144_v16 }
 0x119   :  { %v338_v25 = vrot.slane %v337_v21, 2  ;;  %v333_v26 = vadd.f32 %v332_v22, %v331_v18 }
 0x11a   :  { %v152_v27 = vadd.f32 %v151_v23, %v150_v19  ;;  %v147_v28 = vrot.slane %v146_v24, 1 }
 0x11b   :  { %v339_v29 = vadd.f32 %v338_v25, %v337_v21  ;;  %v334_v30 = vrot.slane %v333_v26, 1 }
 0x11c   :  { %v153_v31 = vrot.slane %v152_v27, 1  ;;  %v148_v32 = vadd.f32 %v147_v28, %v146_v24 }
 0x11d   :  { %v340_v33 = vrot.slane %v339_v29, 1  ;;  %v335_v34 = vadd.f32 %v334_v30, %v333_v26 }
 0x11e   :  { %v154_v35 = vadd.f32 %v153_v31, %v152_v27  ;;  %486 = vrcp.f32 %v148_v32 }
 0x11f   :  { %v341_v36 = vadd.f32 %v340_v33, %v339_v29  ;;  %488 = vrcp.f32 %v335_v34 }
 0x120   :  { %490 = vrcp.f32 %v154_v35 }
 0x121   :  { %492 = vrcp.f32 %v341_v36 }
 0x128   :  { %v487_v37 = vpop.eup %486 }
 0x129   :  { %v489_v38 = vpop.eup %488  ;;  %v156_v43 = vmul.f32 %v487_v37, %v479_v9 }
 0x12a   :  { %v491_v39 = vpop.eup %490  ;;  %v343_v44 = vmul.f32 %v489_v38, %v481_v10 }
 0x12b   :  { %v493_v40 = vpop.eup %492  ;;  %v158_v41 = vmul.f32 %v491_v39, %v483_v12 }
 0x12c   :  { %v345_v42 = vmul.f32 %v493_v40, %v485_v14 }
 0x12d   :  { %223 = vmatprep.mubr.f32.mxu1 %v158_v41 }
 0x12e   :  { %410 = vmatprep.mubr.f32.mxu0 %v345_v42  ;;  %224 = vmatmul.mubr.f32.vlgmr.msra.gmra.mrb[2].mxu1 %v156_v43 }
 0x12f   :  { %411 = vmatmul.mubr.f32.vlgmr.msra.gmra.mrb[2].mxu0 %v343_v44 }
 0x201   :  { %v225_v46 = vpop.f32.mrb[2].mxu1 }
 0x202   :  { %v226_v47 = vadd.f32 %v225_v46, %v33_v45  ;;  %v412_v48 = vpop.f32.mrb[2].mxu0  ;;  %v227_v49 = vpop.f32.mrb[3].mxu1 }
 0x203   :  { %v413_v50 = vadd.f32 %v412_v48, %v33_v45  ;;  %v414_v51 = vpop.f32.mrb[3].mxu0 }
 0x204   :  { %229 = vst.msk [vmem:[#allocation5] sm:$0xff] %vm48_vm0, %v226_v47 }
 0x205   :  { %417 = vst.msk [vmem:[#allocation5 + $0x8] sm:$0xff] %vm48_vm0, %v413_v50 }
 0x206   :  { %527 = shalt.err (!%p524_p12)
}
 0x207   :  { %s528_s10 = scalar_lea.hbm %s616_s4, 256 }
 0x208   :  { %p529_p13 = scmp.ne.s32.totalorder %s616_s4, %s528_s10  ;;  %p532_p0 = scmp.lt.u32.totalorder %s528_s10, %s616_s4 }
 0x20a   :  { %p534_p1 = pnand %p532_p0, %p529_p13 }
 0x20c   :  { %537 = shalt.err (!%p534_p1)
}
 0x20d   :  { %s548_s15 = smov 128   ;;  %s549_s16 = smov 8  }
 0x20e   :  { %429 = dma.vmem_to_hbm [thread:$0]  %s424_s7, 256, %s616_s4, [#allocation4], %s548_s15, %s548_s15, %s549_s16  }
 0x20f   :  { %540 = dma.done.wait [#allocation4], 256  }
 0x210   :  { %541 = vsyncadd [#allocation4], 4294967040 }
 0x211   :  { %433 = vsyncpa [#allocation3], 1 }
 0x212   :  { %434 = vsyncpa [#allocation4], 1 }

</bundles_post_ra>
